<compile_context>
chip_gen: v7x
topology: tpu7x:2x2x1
jax: 0.10.0
libtpu: 0.0.40
codegen_flags: <defaults>
</compile_context>

<pallas_src>
import functools

import jax
import jax.numpy as jnp
from jax.experimental import pallas as pl
from jax.experimental.pallas import tpu as pltpu


_VMEM_LIMIT_BYTES = 48 * 1024 * 1024     # < physical VMEM on v5e/v6e/v7x
_LANE_TILE_MAX = 2048                    # max lanes per spatial tile
_BLOCK_BYTES_BUDGET = 4 * 1024 * 1024    # per x/out block (double-buffered by Pallas)


# ---------------------------------------------------------------------------
# Kernels
# ---------------------------------------------------------------------------
def _pool_kernel(x_ref, s_ref):
    """Partial-sum pooling: accumulate sum over the HW (lane) axis in f32."""
    @pl.when(pl.program_id(1) == 0)
    def _():
        s_ref[...] = jnp.zeros_like(s_ref)
    # (NB, C, THW) -> (NB, C, 1); force f32 accumulation regardless of x dtype.
    s_ref[...] += jnp.sum(x_ref[...].astype(jnp.float32), axis=-1, keepdims=True)


def _mlp_kernel(p_ref, w1t_ref, b1_ref, w2t_ref, b2_ref, a_ref, *, inv_hw):
    """pooled-sum -> mean -> 1x1 conv -> GELU -> 1x1 conv -> sigmoid.

    Weights arrive pre-transposed ((C, C/4) and (C/4, C)) so no in-kernel
    transposes are needed.  Tiny FLOP count; MXU shape is irrelevant here.
    """
    pooled = p_ref[...] * inv_hw                                        # (N, C) mean
    h = jnp.dot(pooled, w1t_ref[...],
                preferred_element_type=jnp.float32) + b1_ref[...]       # (N, C/4)
    h = jax.nn.gelu(h, approximate=False)                               # exact erf GELU
    a = jnp.dot(h, w2t_ref[...],
                preferred_element_type=jnp.float32) + b2_ref[...]       # (N, C)
    a_ref[...] = jax.nn.sigmoid(a).astype(a_ref.dtype)


def _scale_kernel(a_ref, x_ref, o_ref):
    """x * attention; (NB, C, 1) attention broadcasts over the lane (HW) axis."""
    o_ref[...] = (x_ref[...] * a_ref[...]).astype(o_ref.dtype)


# ---------------------------------------------------------------------------
# Tiling heuristics
# ---------------------------------------------------------------------------
def _pick_spatial_tile(hw, c, itemsize):
    """Largest multiple-of-128 divisor of hw that keeps a (1, C, THW) block
    within budget; falls back to the full extent when hw isn't 128-aligned."""
    if hw % 128 != 0:
        return hw                               # full-extent block is always legal
    max_lanes = max(128, (_BLOCK_BYTES_BUDGET // max(1, c * itemsize)) // 128 * 128)
    t = min(hw, max_lanes, _LANE_TILE_MAX)
    t -= t % 128
    while t >= 128:
        if hw % t == 0:
            return t
        t -= 128
    return hw


def _pick_batch_tile(n, c, thw, itemsize):
    """Largest divisor of n whose (NB, C, THW) block fits the per-block budget."""
    for nb in range(n, 0, -1):
        if n % nb == 0 and nb * c * thw * itemsize <= _BLOCK_BYTES_BUDGET:
            return nb
    return 1


# ---------------------------------------------------------------------------
# Wrapper
# ---------------------------------------------------------------------------
def channel_attention(x_nchw, w1, b1, w2, b2):
    """x_nchw: (N, C, H, W).  w1: (C/4, C), b1: (C/4,), w2: (C, C/4), b2: (C,)."""
    N, C, H, W = x_nchw.shape
    Ch = w1.shape[0]
    HW = H * W
    x = x_nchw.reshape(N, C, HW)

    itemsize = jnp.dtype(x.dtype).itemsize
    thw = _pick_spatial_tile(HW, C, itemsize)
    nb = _pick_batch_tile(N, C, thw, itemsize)
    n_n = N // nb
    n_t = HW // thw

    # ---- Pass 1: tiled global-average-pool (partial sums, f32 accumulator) ----
    pooled_sums = pl.pallas_call(
        _pool_kernel,
        out_shape=jax.ShapeDtypeStruct((N, C, 1), jnp.float32),
        grid_spec=pltpu.PrefetchScalarGridSpec(
            num_scalar_prefetch=0,
            grid=(n_n, n_t),
            in_specs=[pl.BlockSpec((nb, C, thw), lambda n, t: (n, 0, t))],
            out_specs=pl.BlockSpec((nb, C, 1), lambda n, t: (n, 0, 0)),
        ),
        compiler_params=pltpu.CompilerParams(
            dimension_semantics=("parallel", "arbitrary"),
            vmem_limit_bytes=_VMEM_LIMIT_BYTES),
    )(x)

    # ---- Pass 2: tiny attention MLP (one grid step; weights pre-transposed) ----
    pooled_nc = pooled_sums.reshape(N, C)
    w1t = jnp.transpose(w1)            # (C, Ch)   transposed once, outside the kernel
    w2t = jnp.transpose(w2)            # (Ch, C)
    b1_2d = b1.reshape(1, Ch)
    b2_2d = b2.reshape(1, C)

    attn = pl.pallas_call(
        functools.partial(_mlp_kernel, inv_hw=1.0 / float(HW)),
        out_shape=jax.ShapeDtypeStruct((N, C), jnp.float32),
        grid_spec=pltpu.PrefetchScalarGridSpec(
            num_scalar_prefetch=0,
            grid=(1,),
            in_specs=[
                pl.BlockSpec((N, C), lambda i: (0, 0)),    # pooled sums
                pl.BlockSpec((C, Ch), lambda i: (0, 0)),   # w1^T
                pl.BlockSpec((1, Ch), lambda i: (0, 0)),   # b1
                pl.BlockSpec((Ch, C), lambda i: (0, 0)),   # w2^T
                pl.BlockSpec((1, C), lambda i: (0, 0)),    # b2
            ],
            out_specs=pl.BlockSpec((N, C), lambda i: (0, 0)),
        ),
        compiler_params=pltpu.CompilerParams(
            dimension_semantics=("arbitrary",)),
    )(pooled_nc, w1t, b1_2d, w2t, b2_2d)

    # ---- Pass 3: scale x by the attention vector (lane-dense HW tiles) ----
    attn3 = attn.reshape(N, C, 1).astype(jnp.float32)
    out = pl.pallas_call(
        _scale_kernel,
        out_shape=jax.ShapeDtypeStruct((N, C, HW), x.dtype),
        grid_spec=pltpu.PrefetchScalarGridSpec(
            num_scalar_prefetch=0,
            grid=(n_n, n_t),
            in_specs=[
                pl.BlockSpec((nb, C, 1), lambda n, t: (n, 0, 0)),     # attention
                pl.BlockSpec((nb, C, thw), lambda n, t: (n, 0, t)),   # x tile
            ],
            out_specs=pl.BlockSpec((nb, C, thw), lambda n, t: (n, 0, t)),
        ),
        compiler_params=pltpu.CompilerParams(
            dimension_semantics=("parallel", "parallel"),
            vmem_limit_bytes=_VMEM_LIMIT_BYTES),
    )(attn3, x)

    return out.reshape(N, C, H, W)


# ---------------------------------------------------------------------------
# Pure-JAX reference of the PyTorch forward
# ---------------------------------------------------------------------------
def _reference(x, w1, b1, w2, b2):
    pooled = jnp.mean(x, axis=(2, 3))                       # (N, C)
    h = jax.nn.gelu(pooled @ w1.T + b1, approximate=False)  # (N, C/4)
    a = jax.nn.sigmoid(h @ w2.T + b2)                       # (N, C)
    return x * a[:, :, None, None]


if __name__ == "__main__":
    # Small, deterministic setup consistent with the module.
    N, C, H, W = 2, 8, 16, 16
    Ch = C // 4

    key = jax.random.PRNGKey(0)
    kx, kw1, kb1, kw2, kb2 = jax.random.split(key, 5)

    x = jax.random.normal(kx, (N, C, H, W), dtype=jnp.float32)

    # Deterministic weight init (PyTorch-conv-like uniform bounds for 1x1 convs).
    bound1 = 1.0 / (C ** 0.5)
    w1 = jax.random.uniform(kw1, (Ch, C), jnp.float32, -bound1, bound1)
    b1 = jax.random.uniform(kb1, (Ch,), jnp.float32, -bound1, bound1)
    bound2 = 1.0 / (Ch ** 0.5)
    w2 = jax.random.uniform(kw2, (C, Ch), jnp.float32, -bound2, bound2)
    b2 = jax.random.uniform(kb2, (C,), jnp.float32, -bound2, bound2)

    out = channel_attention(x, w1, b1, w2, b2)
    out = jax.block_until_ready(out)

    ref = _reference(x, w1, b1, w2, b2)
    assert jnp.allclose(out, ref, atol=1e-5, rtol=1e-5), "mismatch vs reference"

    print("KERNEL_OK")
</pallas_src>

<mosaic_0001>
module attributes {stable_mosaic.version = 11 : i64} {
  func.func @_pool_kernel(%arg0: i32, %arg1: i32, %arg2: memref<2x8x256xf32, #tpu.memory_space<vmem>>, %arg3: memref<2x8x1xf32, #tpu.memory_space<vmem>>) attributes {dimension_semantics = [#tpu.dimension_semantics<parallel>, #tpu.dimension_semantics<arbitrary>], iteration_bounds = array<i64: 1, 1>, scalar_prefetch = 0 : i64, scratch_operands = 0 : i64, tpu.core_type = #tpu.core_type<tc>, window_params = [{transform_indices = @transform_0, window_bounds = array<i64: 2, 8, 256>}, {transform_indices = @transform_1, window_bounds = array<i64: 2, 8, 1>}]} {
    %c0_i32 = arith.constant 0 : i32
    %0 = arith.cmpi eq, %arg1, %c0_i32 : i32
    %1 = arith.extui %0 : i1 to i32
    %c0_i32_0 = arith.constant 0 : i32
    %2 = arith.cmpi ne, %1, %c0_i32_0 : i32
    scf.if %2 {
      %cst_9 = arith.constant 0.000000e+00 : f32
      %9 = vector.broadcast %cst_9 : f32 to vector<2x8x1xf32>
      %c0_10 = arith.constant 0 : index
      %c0_11 = arith.constant 0 : index
      %c0_12 = arith.constant 0 : index
      %10 = vector.load %arg3[%c0_10, %c0_11, %c0_12] : memref<2x8x1xf32, #tpu.memory_space<vmem>>, vector<2x8x1xf32>
      tpu.vector_store %arg3[%c0_10, %c0_11, %c0_12], %9 {strides = array<i32>} : memref<2x8x1xf32, #tpu.memory_space<vmem>>, vector<2x8x1xf32>,
    } else {
    }
    %c0 = arith.constant 0 : index
    %c0_1 = arith.constant 0 : index
    %c0_2 = arith.constant 0 : index
    %3 = vector.load %arg3[%c0, %c0_1, %c0_2] : memref<2x8x1xf32, #tpu.memory_space<vmem>>, vector<2x8x1xf32>
    %c0_3 = arith.constant 0 : index
    %c0_4 = arith.constant 0 : index
    %c0_5 = arith.constant 0 : index
    %4 = vector.load %arg2[%c0_3, %c0_4, %c0_5] : memref<2x8x256xf32, #tpu.memory_space<vmem>>, vector<2x8x256xf32>
    %cst = arith.constant dense<0.000000e+00> : vector<2x8xf32>
    %5 = vector.multi_reduction <add>, %4, %cst [2] : vector<2x8x256xf32> to vector<2x8xf32>
    %6 = vector.shape_cast %5 : vector<2x8xf32> to vector<2x8x1xf32>
    %7 = arith.addf %3, %6 : vector<2x8x1xf32>
    %c0_6 = arith.constant 0 : index
    %c0_7 = arith.constant 0 : index
    %c0_8 = arith.constant 0 : index
    %8 = vector.load %arg3[%c0_6, %c0_7, %c0_8] : memref<2x8x1xf32, #tpu.memory_space<vmem>>, vector<2x8x1xf32>
    tpu.vector_store %arg3[%c0_6, %c0_7, %c0_8], %7 {strides = array<i32>} : memref<2x8x1xf32, #tpu.memory_space<vmem>>, vector<2x8x1xf32>,
    return
  }
  func.func @transform_0(%arg0: i32, %arg1: i32) -> (i32, i32, i32) {
    %c0_i32 = arith.constant 0 : i32
    %c0_i32_0 = arith.constant 0 : i32
    return %arg0, %c0_i32, %arg1 : i32, i32, i32
  }
  func.func @transform_1(%arg0: i32, %arg1: i32) -> (i32, i32, i32) {
    %c0_i32 = arith.constant 0 : i32
    %c0_i32_0 = arith.constant 0 : i32
    %c0_i32_1 = arith.constant 0 : i32
    return %arg0, %c0_i32, %c0_i32_0 : i32, i32, i32
  }
}

</mosaic_0001>

<bundles_post_ra>
// kernel: tpu_custom_call.1
= control target key start
LH: loop header
LB: loop body
LE: loop exit
PB: predicated region body
PF: predicated region fallthrough
CT: control target
= control target key end

     0   :  { %6 = vsyncpa [#allocation3], 0  ;;  %s79_s6 = smov [#allocation2]   ;;  %s127_s0 = inlined_call_operand.hbm [shape: f32[2,8,256], index: 0, kind: input, shape index: {}]   ;;  %s128_s1 = inlined_call_operand.vmem [shape: f32[2,8,1], index: 1, kind: output, shape index: {}]  }
   0x1   :  { %s12_s7 = sshll.u32 %s79_s6, 4  ;;  %s55_s10 = scalar_lea.hbm %s127_s0, 512  ;;  %s13_s7 = int_to_ptr.vmem [resolvable:$true] %s12_s7 }
   0x2   :  { %p56_p0 = scmp.ne.s32.totalorder %s127_s0, %s55_s10  ;;  %p59_p1 = scmp.lt.u32.totalorder %s55_s10, %s127_s0 }
   0x4   :  { %p61_p2 = pnand %p59_p1, %p56_p0 }
   0x6   :  { %64 = shalt.err (!%p61_p2)
}
   0x7   :  { %s65_s15 = scalar_lea.vmem %s13_s7, 512  ;;  %p70_p4 = scmp.lt.s32.totalorder %s13_s7, %s13_s7 }
   0x8   :  { %p66_p3 = scmp.ne.s32.totalorder %s13_s7, %s65_s15  ;;  %p71_p5 = scmp.lt.s32.totalorder %s65_s15, %s65_s15 }
   0xa   :  { %p72_p6 = por %p71_p5, %p70_p4 }
   0xc   :  { %p73_p7 = pnand %p72_p6, %p66_p3 }
   0xe   :  { %76 = shalt.err (!%p73_p7)
}
   0xf   :  { %s80_s16 = smov 256   ;;  %s81_s17 = smov 16  }
  0x10   :  { %18 = dma.hbm_to_vmem [thread:$0]  %s127_s0, 512, %s13_s7, [#allocation3], %s80_s16, %s80_s16, %s81_s17  }
  0x11   :  { %77 = dma.done.wait [#allocation3], 512  }
  0x12   :  { %78 = vsyncadd [#allocation3], 4294966784  ;;  %vm26_vm0 = vcmask 7168   ;;  %v82_v0 = vmov 0.0   ;;  %v31_v1 = vld [vmem:[#allocation2] sm:$0xff]  ;;  %v32_v2 = vld [vmem:[#allocation2 + $0x8] sm:$0xff] }
  0x13   :  { %27 = vst.msk [vmem:[%s128_s1] sm:$0xff] %vm26_vm0, %v82_v0  ;;  %28 = vst.msk [vmem:[%s128_s1 + $0x8] sm:$0xff] %vm26_vm0, %v82_v0  ;;  %v33_v3 = vld [vmem:[#allocation2 + $0x10] sm:$0xff]  ;;  %v35_v4 = vadd.f32 %v32_v2, %v31_v1  ;;  %v34_v5 = vld [vmem:[#allocation2 + $0x18] sm:$0xff] }
  0x14   :  { %v38_v6 = vadd.f32 %v34_v5, %v33_v3 }
  0x15   :  { %36 = vadd.xlane.f32.xlu0 %v35_v4 }
  0x19   :  { %39 = vadd.xlane.f32.xlu0 %v38_v6 }
  0x1a   :  { %v29_v7 = vld [vmem:[%s128_s1] sm:$0xff]  ;;  %v30_v10 = vld [vmem:[%s128_s1 + $0x8] sm:$0xff] }
  0xa2   :  { %v37_v8 = vpop.xlane.xlu0 %36 }
  0xa3   :  { %v41_v9 = vadd.f32 %v37_v8, %v29_v7 }
  0xa5   :  { %44 = vst.msk [vmem:[%s128_s1] sm:$0xff] %vm26_vm0, %v41_v9 }
  0xa6   :  { %v40_v11 = vpop.xlane.xlu0 %39 }
  0xa7   :  { %v42_v12 = vadd.f32 %v40_v11, %v30_v10 }
  0xa9   :  { %45 = vst.msk [vmem:[%s128_s1 + $0x8] sm:$0xff] %vm26_vm0, %v42_v12 }
  0xaa   :  { %50 = vsyncpa [#allocation3], 1 }

</bundles_post_ra>
